<compile_context>
chip_gen: v7x
topology: tpu7x:2x2x1
jax: 0.10.0
libtpu: 0.0.40
codegen_flags: <defaults>
</compile_context>

<pallas_src>
import jax
import jax.numpy as jnp
from jax import lax
from jax.experimental import pallas as pl
from jax.experimental.pallas import tpu as pltpu

IN_DIM = 130
PAD_IN = 136                 # 130 padded to a multiple of 8
HID = 64
OUT_DIM = 8
PACK = 3 * HID + OUT_DIM     # 200 packed output lanes: [x2 | x3 | x4 | x5]

# Row offsets inside the single (400, 64) parameter slab.
O_W0 = 0                     # rows   0..135 : fc0 weight (130 rows + 6 zero rows)
O_W1 = O_W0 + PAD_IN         # rows 136..199 : fc1 weight
O_W2 = O_W1 + HID            # rows 200..263 : fc2 weight
O_W3 = O_W2 + HID            # rows 264..327 : fc3 weight
O_W4 = O_W3 + HID            # rows 328..391 : fc4 weight (cols 8..63 zero)
O_B = O_W4 + HID             # rows 392..399 : biases b0..b4 (b4 zero-padded), rows 5..7 zero
P_ROWS = O_B + 8             # 400


def _round_up(v, m):
    return -(-v // m) * m


def pack_params(params):
    """Pack the 10 weight/bias arrays into one (400, 64) slab.  Call ONCE, reuse."""
    (w0, b0), (w1, b1), (w2, b2), (w3, b3), (w4, b4) = params
    w0p = jnp.pad(w0, ((0, PAD_IN - IN_DIM), (0, 0)))            # (136, 64)
    w4p = jnp.pad(w4, ((0, 0), (0, HID - OUT_DIM)))              # (64, 64)
    b4p = jnp.pad(b4, (0, HID - OUT_DIM))                        # (64,)
    b_tile = jnp.pad(jnp.stack([b0, b1, b2, b3, b4p], axis=0),
                     ((0, 3), (0, 0)))                           # (8, 64)
    slab = jnp.concatenate([w0p, w1, w2, w3, w4p, b_tile], axis=0)
    assert slab.shape == (P_ROWS, HID)
    return slab


def _make_kernel(sub_rows, n_sub):
    """Kernel over one (TB, PAD_IN) batch tile; TB = sub_rows * n_sub."""

    def kernel(x_ref, p_ref, out_ref):
        bias = p_ref[O_B:O_B + 8, :]                             # (8, 64), 1 vreg

        def sub_tile(s, carry):
            r = pl.multiple_of(s * sub_rows, sub_rows)
            xs = x_ref[pl.ds(r, sub_rows), :]                    # (ST, 136)

            x1 = jnp.dot(xs, p_ref[O_W0:O_W1, :],
                         preferred_element_type=jnp.float32) + bias[0:1, :]
            x2 = jnp.maximum(
                jnp.dot(x1, p_ref[O_W1:O_W2, :],
                        preferred_element_type=jnp.float32) + bias[1:2, :], 0.0)
            out_ref[pl.ds(r, sub_rows), pl.ds(0, HID)] = x2

            x3 = jnp.maximum(
                jnp.dot(x2, p_ref[O_W2:O_W3, :],
                        preferred_element_type=jnp.float32) + bias[2:3, :], 0.0)
            out_ref[pl.ds(r, sub_rows), pl.ds(HID, HID)] = x3

            x4 = jnp.maximum(
                jnp.dot(x3, p_ref[O_W3:O_W4, :],
                        preferred_element_type=jnp.float32) + bias[3:4, :], 0.0)
            out_ref[pl.ds(r, sub_rows), pl.ds(2 * HID, HID)] = x4

            x5 = jnp.dot(x4, p_ref[O_W4:O_B, :],
                         preferred_element_type=jnp.float32) + bias[4:5, :]
            out_ref[pl.ds(r, sub_rows), pl.ds(3 * HID, OUT_DIM)] = x5[:, 0:OUT_DIM]
            return carry

        lax.fori_loop(0, n_sub, sub_tile, 0, unroll=True)

    return kernel


@jax.jit
def rnn_arch_2_final_forward(x, hc, param_slab):
    """Pallas forward.  `hc` mirrors the PyTorch signature but is unused."""
    del hc
    B = x.shape[0]
    assert x.shape[1] == IN_DIM

    # --- batch tiling (static per trace) ------------------------------------
    # Small B: single grid step covering the whole (8-aligned) batch.
    # Moderate B: ~2 grid steps so the parallel axis can use both v7x cores.
    # Large B: 512-row DMA tiles with an inner 128-row compute loop.
    if B <= 64:
        sub_rows = tile_rows = _round_up(max(B, 8), 8)
        b_pad = tile_rows
    else:
        sub_rows = min(128, _round_up((B + 1) // 2, 8))
        half = _round_up((B + 1) // 2, sub_rows)
        tile_rows = min(512, half)
        b_pad = _round_up(B, tile_rows)
    n_sub = tile_rows // sub_rows
    grid = (b_pad // tile_rows,)

    x_in = jnp.pad(x, ((0, b_pad - B), (0, PAD_IN - IN_DIM)))

    flops = 2 * b_pad * (PAD_IN + 4 * HID) * HID
    bytes_accessed = 4 * (b_pad * PAD_IN + P_ROWS * HID + b_pad * PACK)

    packed = pl.pallas_call(
        _make_kernel(sub_rows, n_sub),
        out_shape=jax.ShapeDtypeStruct((b_pad, PACK), jnp.float32),
        grid=grid,
        in_specs=[
            pl.BlockSpec((tile_rows, PAD_IN), lambda i: (i, 0)),   # x tile
            pl.BlockSpec((P_ROWS, HID), lambda i: (0, 0)),         # param slab (resident)
        ],
        out_specs=pl.BlockSpec((tile_rows, PACK), lambda i: (i, 0)),
        compiler_params=pltpu.CompilerParams(
            dimension_semantics=("parallel",)),
        cost_estimate=pl.CostEstimate(
            flops=flops, transcendentals=0, bytes_accessed=bytes_accessed),
    )(x_in, param_slab)

    # The four returned arrays are distinct jit outputs, so these slices
    # necessarily materialize; all payload lanes (200) are used, none wasted.
    x2 = packed[:B, 0:HID]
    x3 = packed[:B, HID:2 * HID]
    x4 = packed[:B, 2 * HID:3 * HID]
    x5 = packed[:B, 3 * HID:3 * HID + OUT_DIM]
    return x5, x4, x3, x2


def init_params(key):
    """Deterministic init matching the nn.Linear shapes (stored as [in, out])."""
    dims = [(IN_DIM, HID), (HID, HID), (HID, HID), (HID, HID), (HID, OUT_DIM)]
    params = []
    for din, dout in dims:
        kw, kb, key = jax.random.split(key, 3)
        bound = 1.0 / jnp.sqrt(din)
        w = jax.random.uniform(kw, (din, dout), jnp.float32, -bound, bound)
        b = jax.random.uniform(kb, (dout,), jnp.float32, -bound, bound)
        params.append((w, b))
    return params


def reference_forward(x, params):
    (w0, b0), (w1, b1), (w2, b2), (w3, b3), (w4, b4) = params
    x1 = x @ w0 + b0
    x2 = jnp.maximum(x1 @ w1 + b1, 0.0)
    x3 = jnp.maximum(x2 @ w2 + b2, 0.0)
    x4 = jnp.maximum(x3 @ w3 + b3, 0.0)
    x5 = x4 @ w4 + b4
    return x5, x4, x3, x2


if __name__ == "__main__":
    key = jax.random.PRNGKey(0)
    kx, kh, kp = jax.random.split(key, 3)

    batch = 8
    x = jax.random.normal(kx, (batch, IN_DIM), jnp.float32)
    hc = jax.random.normal(kh, (batch, HID), jnp.float32)  # unused, mirrors signature
    params = init_params(kp)

    # Pack/pad the weights ONCE outside the jitted forward (reused across calls).
    param_slab = pack_params(params)

    outs = rnn_arch_2_final_forward(x, hc, param_slab)
    outs = jax.block_until_ready(outs)

    refs = reference_forward(x, params)
    for o, r in zip(outs, refs):
        assert o.shape == r.shape and o.dtype == r.dtype
        assert jnp.allclose(o, r, atol=1e-4, rtol=1e-4), "mismatch vs reference"

    print("KERNEL_OK")
</pallas_src>

<mosaic_0001>
module attributes {stable_mosaic.version = 11 : i64} {
  func.func @kernel(%arg0: i32, %arg1: memref<8x136xf32, #tpu.memory_space<vmem>>, %arg2: memref<400x64xf32, #tpu.memory_space<vmem>>, %arg3: memref<8x200xf32, #tpu.memory_space<vmem>>) attributes {dimension_semantics = [#tpu.dimension_semantics<parallel>], iteration_bounds = array<i64: 1>, scalar_prefetch = 0 : i64, scratch_operands = 0 : i64, tpu.core_type = #tpu.core_type<tc>, window_params = [{transform_indices = @transform_0, window_bounds = array<i64: 8, 136>}, {pipeline_mode = #tpu.pipeline_mode<synchronous>, transform_indices = @transform_1, window_bounds = array<i64: 400, 64>}, {transform_indices = @transform_2, window_bounds = array<i64: 8, 200>}]} {
    %c392 = arith.constant 392 : index
    %c0 = arith.constant 0 : index
    %0 = vector.load %arg2[%c392, %c0] : memref<400x64xf32, #tpu.memory_space<vmem>>, vector<8x64xf32>
    %c0_i32 = arith.constant 0 : i32
    %c8_i32 = arith.constant 8 : i32
    %1 = arith.muli %c0_i32, %c8_i32 : i32
    %2 = tpu.assume_multiple %1, 8 : i32
    %3 = arith.index_cast %2 : i32 to index
    %c0_0 = arith.constant 0 : index
    %4 = vector.load %arg1[%3, %c0_0] : memref<8x136xf32, #tpu.memory_space<vmem>>, vector<8x136xf32>
    %c0_1 = arith.constant 0 : index
    %c0_2 = arith.constant 0 : index
    %5 = vector.load %arg2[%c0_1, %c0_2] : memref<400x64xf32, #tpu.memory_space<vmem>>, vector<136x64xf32>
    %cst = arith.constant dense<0.000000e+00> : vector<8x64xf32>
    %6 = tpu.matmul %4, %5, %cst {dimension_numbers = #tpu.dot_dimension_numbers<[1], [0], [0], [1], [0, 0, 1, 1], [], []>} : vector<8x136xf32>, vector<136x64xf32>, vector<8x64xf32> -> vector<8x64xf32>
    %7 = vector.extract_strided_slice %0 {offsets = [0, 0], sizes = [1, 64], strides = [1, 1]} : vector<8x64xf32> to vector<1x64xf32>
    %8 = vector.broadcast %7 : vector<1x64xf32> to vector<8x64xf32>
    %9 = arith.addf %6, %8 : vector<8x64xf32>
    %c136 = arith.constant 136 : index
    %c0_3 = arith.constant 0 : index
    %10 = vector.load %arg2[%c136, %c0_3] : memref<400x64xf32, #tpu.memory_space<vmem>>, vector<64x64xf32>
    %cst_4 = arith.constant dense<0.000000e+00> : vector<8x64xf32>
    %11 = tpu.matmul %9, %10, %cst_4 {dimension_numbers = #tpu.dot_dimension_numbers<[1], [0], [0], [1], [0, 0, 1, 1], [], []>} : vector<8x64xf32>, vector<64x64xf32>, vector<8x64xf32> -> vector<8x64xf32>
    %12 = vector.extract_strided_slice %0 {offsets = [1, 0], sizes = [1, 64], strides = [1, 1]} : vector<8x64xf32> to vector<1x64xf32>
    %13 = vector.broadcast %12 : vector<1x64xf32> to vector<8x64xf32>
    %14 = arith.addf %11, %13 : vector<8x64xf32>
    %cst_5 = arith.constant 0.000000e+00 : f32
    %15 = vector.broadcast %cst_5 : f32 to vector<8x64xf32>
    %16 = arith.maximumf %14, %15 : vector<8x64xf32>
    %17 = arith.index_cast %2 : i32 to index
    %c0_6 = arith.constant 0 : index
    %18 = vector.load %arg3[%17, %c0_6] : memref<8x200xf32, #tpu.memory_space<vmem>>, vector<8x64xf32>
    tpu.vector_store %arg3[%17, %c0_6], %16 {strides = array<i32>} : memref<8x200xf32, #tpu.memory_space<vmem>>, vector<8x64xf32>,
    %c200 = arith.constant 200 : index
    %c0_7 = arith.constant 0 : index
    %19 = vector.load %arg2[%c200, %c0_7] : memref<400x64xf32, #tpu.memory_space<vmem>>, vector<64x64xf32>
    %cst_8 = arith.constant dense<0.000000e+00> : vector<8x64xf32>
    %20 = tpu.matmul %16, %19, %cst_8 {dimension_numbers = #tpu.dot_dimension_numbers<[1], [0], [0], [1], [0, 0, 1, 1], [], []>} : vector<8x64xf32>, vector<64x64xf32>, vector<8x64xf32> -> vector<8x64xf32>
    %21 = vector.extract_strided_slice %0 {offsets = [2, 0], sizes = [1, 64], strides = [1, 1]} : vector<8x64xf32> to vector<1x64xf32>
    %22 = vector.broadcast %21 : vector<1x64xf32> to vector<8x64xf32>
    %23 = arith.addf %20, %22 : vector<8x64xf32>
    %cst_9 = arith.constant 0.000000e+00 : f32
    %24 = vector.broadcast %cst_9 : f32 to vector<8x64xf32>
    %25 = arith.maximumf %23, %24 : vector<8x64xf32>
    %26 = arith.index_cast %2 : i32 to index
    %c64 = arith.constant 64 : index
    %27 = vector.load %arg3[%26, %c64] : memref<8x200xf32, #tpu.memory_space<vmem>>, vector<8x64xf32>
    tpu.vector_store %arg3[%26, %c64], %25 {strides = array<i32>} : memref<8x200xf32, #tpu.memory_space<vmem>>, vector<8x64xf32>,
    %c264 = arith.constant 264 : index
    %c0_10 = arith.constant 0 : index
    %28 = vector.load %arg2[%c264, %c0_10] : memref<400x64xf32, #tpu.memory_space<vmem>>, vector<64x64xf32>
    %cst_11 = arith.constant dense<0.000000e+00> : vector<8x64xf32>
    %29 = tpu.matmul %25, %28, %cst_11 {dimension_numbers = #tpu.dot_dimension_numbers<[1], [0], [0], [1], [0, 0, 1, 1], [], []>} : vector<8x64xf32>, vector<64x64xf32>, vector<8x64xf32> -> vector<8x64xf32>
    %30 = vector.extract_strided_slice %0 {offsets = [3, 0], sizes = [1, 64], strides = [1, 1]} : vector<8x64xf32> to vector<1x64xf32>
    %31 = vector.broadcast %30 : vector<1x64xf32> to vector<8x64xf32>
    %32 = arith.addf %29, %31 : vector<8x64xf32>
    %cst_12 = arith.constant 0.000000e+00 : f32
    %33 = vector.broadcast %cst_12 : f32 to vector<8x64xf32>
    %34 = arith.maximumf %32, %33 : vector<8x64xf32>
    %35 = arith.index_cast %2 : i32 to index
    %c128 = arith.constant 128 : index
    %36 = vector.load %arg3[%35, %c128] : memref<8x200xf32, #tpu.memory_space<vmem>>, vector<8x64xf32>
    tpu.vector_store %arg3[%35, %c128], %34 {strides = array<i32>} : memref<8x200xf32, #tpu.memory_space<vmem>>, vector<8x64xf32>,
    %c328 = arith.constant 328 : index
    %c0_13 = arith.constant 0 : index
    %37 = vector.load %arg2[%c328, %c0_13] : memref<400x64xf32, #tpu.memory_space<vmem>>, vector<64x64xf32>
    %cst_14 = arith.constant dense<0.000000e+00> : vector<8x64xf32>
    %38 = tpu.matmul %34, %37, %cst_14 {dimension_numbers = #tpu.dot_dimension_numbers<[1], [0], [0], [1], [0, 0, 1, 1], [], []>} : vector<8x64xf32>, vector<64x64xf32>, vector<8x64xf32> -> vector<8x64xf32>
    %39 = vector.extract_strided_slice %0 {offsets = [4, 0], sizes = [1, 64], strides = [1, 1]} : vector<8x64xf32> to vector<1x64xf32>
    %40 = vector.broadcast %39 : vector<1x64xf32> to vector<8x64xf32>
    %41 = arith.addf %38, %40 : vector<8x64xf32>
    %42 = vector.extract_strided_slice %41 {offsets = [0, 0], sizes = [8, 8], strides = [1, 1]} : vector<8x64xf32> to vector<8x8xf32>
    %43 = arith.index_cast %2 : i32 to index
    %c192 = arith.constant 192 : index
    %44 = vector.load %arg3[%43, %c192] : memref<8x200xf32, #tpu.memory_space<vmem>>, vector<8x8xf32>
    tpu.vector_store %arg3[%43, %c192], %42 {strides = array<i32>} : memref<8x200xf32, #tpu.memory_space<vmem>>, vector<8x8xf32>,
    %c1_i32 = arith.constant 1 : i32
    return
  }
  func.func @transform_0(%arg0: i32) -> (i32, i32) {
    %c0_i32 = arith.constant 0 : i32
    %c0_i32_0 = arith.constant 0 : i32
    return %arg0, %c0_i32 : i32, i32
  }
  func.func @transform_1(%arg0: i32) -> (i32, i32) {
    %c0_i32 = arith.constant 0 : i32
    %c0_i32_0 = arith.constant 0 : i32
    %c0_i32_1 = arith.constant 0 : i32
    return %c0_i32, %c0_i32_0 : i32, i32
  }
  func.func @transform_2(%arg0: i32) -> (i32, i32) {
    %c0_i32 = arith.constant 0 : i32
    %c0_i32_0 = arith.constant 0 : i32
    return %arg0, %c0_i32 : i32, i32
  }
}

</mosaic_0001>

<bundles_post_ra>
// kernel: rnn_arch_2_final_forward.1
= control target key start
LH: loop header
LB: loop body
LE: loop exit
PB: predicated region body
PF: predicated region fallthrough
CT: control target
= control target key end

     0   :  { %v668_v0 = vmov 0.0|0.0   ;;  %vm38_vm0 = vcmask 64512   ;;  %v669_v35 = vmov 0.0   ;;  %vm670_vm1 = vmmov 0   ;;  %s671_s25 = smov 64   ;;  %s903_s1 = inlined_call_operand.vmem [shape: f32[400,64], index: 1, kind: input, shape index: {}]   ;;  %s904_s0 = inlined_call_operand.vmem [shape: f32[8,136], index: 0, kind: input, shape index: {}]   ;;  %s905_s2 = inlined_call_operand.vmem [shape: f32[8,200], index: 2, kind: output, shape index: {}]  }
   0x1   :  { %592 = vmatprep.subr.bf16.mxu0 %v668_v0  ;;  %v17_v1 = vld [vmem:[%s903_s1] sm:$0xff]  ;;  %v18_v2 = vld [vmem:[%s903_s1 + $0x8] sm:$0xff]  ;;  %v19_v3 = vld [vmem:[%s903_s1 + $0x10] sm:$0xff]  ;;  %616 = vmatprep.subr.bf16.mxu1 %v668_v0  ;;  %v34_v41 = vlaneseq  ;;  %vm124_vm2 = vcmask 523264   ;;  %vm292_vm3 = vcmask 1048064   ;;  %vm469_vm4 = vcmask 589312  }
   0x2   :  { %v593_v4 = vpack.c.bf16 %v18_v2, %v17_v1  ;;  %v20_v5 = vld [vmem:[%s903_s1 + $0x18] sm:$0xff]  ;;  %v21_v7 = vld [vmem:[%s903_s1 + $0x20] sm:$0xff]  ;;  %v22_v8 = vld [vmem:[%s903_s1 + $0x28] sm:$0xff]  ;;  %532 = vmatprep.mubr.msk.f32.mxu1 %vm670_vm1, %v669_v35 }
   0x3   :  { %v596_v6 = vpack.c.bf16 %v20_v5, %v19_v3  ;;  %v16_v9 = vld [vmem:[%s904_s0 + $0x8] sm:$0xff]  ;;  %v113_v11 = vld [vmem:[%s903_s1 + $0x90] sm:$0xff]  ;;  %v599_v12 = vpack.c.bf16 %v22_v8, %v21_v7  ;;  %v114_v14 = vld [vmem:[%s903_s1 + $0x98] sm:$0xff]  ;;  %v784_v42 = vshrl.u32 %v34_v41, 7 }
   0x4   :  { %594 = vmatpush1.bf16.msra.mxu0 %v593_v4  ;;  %475 = vmatprep.mubr.msk.f32.mxu0 %vm38_vm0, %v16_v9  ;;  %v112_v10 = vld [vmem:[%s903_s1 + $0x88] sm:$0xff]  ;;  %v115_v15 = vld [vmem:[%s903_s1 + $0xa0] sm:$0xff]  ;;  %v23_v16 = vld [vmem:[%s903_s1 + $0x30] sm:$0xff] }
   0x5   :  { %595 = vmatprep.subr.bf16.mxu0 %v668_v0  ;;  %v617_v13 = vpack.c.bf16 %v113_v11, %v112_v10  ;;  %v24_v17 = vld [vmem:[%s903_s1 + $0x38] sm:$0xff]  ;;  %v620_v18 = vpack.c.bf16 %v115_v15, %v114_v14  ;;  %v116_v19 = vld [vmem:[%s903_s1 + $0xa8] sm:$0xff]  ;;  %v117_v20 = vld [vmem:[%s903_s1 + $0xb0] sm:$0xff]  ;;  %v36_v43 = vsub.s32 0, %v784_v42  ;;  %v122_v61 = vsub.s32 1, %v784_v42 }
   0x6   :  { %v602_v21 = vpack.c.bf16 %v24_v17, %v23_v16  ;;  %v25_v22 = vld [vmem:[%s903_s1 + $0x40] sm:$0xff]  ;;  %v26_v23 = vld [vmem:[%s903_s1 + $0x48] sm:$0xff]  ;;  %v623_v24 = vpack.c.bf16 %v117_v20, %v116_v19  ;;  %v27_v26 = vld [vmem:[%s903_s1 + $0x50] sm:$0xff]  ;;  %v212_v19 = vsub.s32 2, %v784_v42 }
   0x7   :  { %618 = vmatpush3.bf16.msra.mxu1 %v617_v13  ;;  %v605_v25 = vpack.c.bf16 %v26_v23, %v25_v22  ;;  %v28_v27 = vld [vmem:[%s903_s1 + $0x58] sm:$0xff]  ;;  %v29_v29 = vld [vmem:[%s903_s1 + $0x60] sm:$0xff]  ;;  %v30_v30 = vld [vmem:[%s903_s1 + $0x68] sm:$0xff] }
   0x8   :  { %597 = vmatpush1.bf16.msra.mxu0 %v596_v6  ;;  %619 = vmatprep.subr.bf16.mxu1 %v668_v0  ;;  %v608_v28 = vpack.c.bf16 %v28_v27, %v27_v26  ;;  %v611_v31 = vpack.c.bf16 %v30_v30, %v29_v29  ;;  %v31_v32 = vld [vmem:[%s903_s1 + $0x70] sm:$0xff]  ;;  %v32_v33 = vld [vmem:[%s903_s1 + $0x78] sm:$0xff]  ;;  %v33_v36 = vld [vmem:[%s903_s1 + $0x80] sm:$0xff] }
   0x9   :  { %598 = vmatprep.subr.bf16.mxu0 %v668_v0  ;;  %v614_v34 = vpack.c.bf16 %v32_v33, %v31_v32  ;;  %v15_v37 = vld [vmem:[%s904_s0] sm:$0xff]  ;;  %v118_v38 = vld [vmem:[%s903_s1 + $0xb8] sm:$0xff]  ;;  %v790_v44 = vld [vmem:[%s903_s1 + $0x188] sm:$0xff] }
   0xa   :  { %v119_v39 = vld [vmem:[%s903_s1 + $0xc0] sm:$0xff]  ;;  %v37_v45 = vrot.slane %v790_v44, %v36_v43  ;;  %v202_v46 = vld [vmem:[%s903_s1 + $0xc8] sm:$0xff]  ;;  %v203_v47 = vld [vmem:[%s903_s1 + $0xd0] sm:$0xff]  ;;  %v123_v62 = vrot.slane %v790_v44, %v122_v61 }
   0xb   :  { %621 = vmatpush3.bf16.msra.mxu1 %v620_v18  ;;  %v626_v40 = vpack.c.bf16 %v119_v39, %v118_v38  ;;  %v629_v49 = vpack.c.bf16 %v203_v47, %v202_v46  ;;  %v204_v52 = vld [vmem:[%s903_s1 + $0xd8] sm:$0xff]  ;;  %v205_v53 = vld [vmem:[%s903_s1 + $0xe0] sm:$0xff]  ;;  %v206_v55 = vld [vmem:[%s903_s1 + $0xe8] sm:$0xff] }
   0xc   :  { %600 = vmatpush1.bf16.msra.mxu0 %v599_v12  ;;  %622 = vmatprep.subr.bf16.mxu1 %v668_v0  ;;  %v632_v54 = vpack.c.bf16 %v205_v53, %v204_v52  ;;  %v207_v56 = vld [vmem:[%s903_s1 + $0xf0] sm:$0xff]  ;;  %v208_v58 = vld [vmem:[%s903_s1 + $0xf8] sm:$0xff]  ;;  %v209_v59 = vld [vmem:[%s903_s1 + $0x100] sm:$0xff] }
   0xd   :  { %601 = vmatprep.subr.bf16.mxu0 %v668_v0  ;;  %v635_v57 = vpack.c.bf16 %v207_v56, %v206_v55  ;;  %v638_v60 = vpack.c.bf16 %v209_v59, %v208_v58  ;;  %v294_v63 = vld [vmem:[%s903_s1 + $0x108] sm:$0xff]  ;;  %v295_v1 = vld [vmem:[%s903_s1 + $0x110] sm:$0xff]  ;;  %v296_v7 = vld [vmem:[%s903_s1 + $0x118] sm:$0xff] }
   0xe   :  { %v641_v5 = vpack.c.bf16 %v295_v1, %v294_v63  ;;  %v297_v8 = vld [vmem:[%s903_s1 + $0x120] sm:$0xff]  ;;  %v298_v10 = vld [vmem:[%s903_s1 + $0x128] sm:$0xff]  ;;  %v299_v11 = vld [vmem:[%s903_s1 + $0x130] sm:$0xff] }
   0xf   :  { %624 = vmatpush3.bf16.msra.mxu1 %v623_v24  ;;  %v644_v9 = vpack.c.bf16 %v297_v8, %v296_v7  ;;  %v647_v12 = vpack.c.bf16 %v299_v11, %v298_v10  ;;  %v300_v13 = vld [vmem:[%s903_s1 + $0x138] sm:$0xff]  ;;  %v301_v14 = vld [vmem:[%s903_s1 + $0x140] sm:$0xff]  ;;  %v380_v16 = vld [vmem:[%s903_s1 + $0x148] sm:$0xff] }
  0x10   :  { %603 = vmatpush1.bf16.msra.mxu0 %v602_v21  ;;  %625 = vmatprep.subr.bf16.mxu1 %v668_v0  ;;  %v650_v15 = vpack.c.bf16 %v301_v14, %v300_v13  ;;  %v381_v17 = vld [vmem:[%s903_s1 + $0x150] sm:$0xff]  ;;  %v382_v18 = vld [vmem:[%s903_s1 + $0x158] sm:$0xff]  ;;  %v383_v21 = vld [vmem:[%s903_s1 + $0x160] sm:$0xff] }
  0x11   :  { %604 = vmatprep.subr.bf16.mxu0 %v668_v0  ;;  %v653_v20 = vpack.c.bf16 %v381_v17, %v380_v16  ;;  %v656_v22 = vpack.c.bf16 %v383_v21, %v382_v18  ;;  %v384_v23 = vld [vmem:[%s903_s1 + $0x168] sm:$0xff]  ;;  %v385_v24 = vld [vmem:[%s903_s1 + $0x170] sm:$0xff]  ;;  %v387_v32 = vld [vmem:[%s903_s1 + $0x180] sm:$0xff] }
  0x12   :  { %v659_v26 = vpack.c.bf16 %v385_v24, %v384_v23 }
  0x13   :  { %627 = vmatpush3.bf16.msra.mxu1 %v626_v40  ;;  %v390_v40 = vsub.s32 4, %v784_v42 }
  0x14   :  { %606 = vmatpush1.bf16.msra.mxu0 %v605_v25  ;;  %628 = vmatprep.subr.bf16.mxu1 %v668_v0  ;;  %v213_v25 = vrot.slane %v790_v44, %v212_v19 }
  0x15   :  { %607 = vmatprep.subr.bf16.mxu0 %v668_v0  ;;  %v391_v41 = vrot.slane %v790_v44, %v390_v40 }
  0x18   :  { %609 = vmatpush1.bf16.msra.mxu0 %v608_v28 }
  0x19   :  { %610 = vmatprep.subr.bf16.mxu0 %v668_v0 }
  0x1c   :  { %612 = vmatpush1.bf16.msra.mxu0 %v611_v31  ;;  %v386_v31 = vld [vmem:[%s903_s1 + $0x178] sm:$0xff] }
  0x1d   :  { %613 = vmatprep.subr.bf16.mxu0 %v668_v0  ;;  %v662_v33 = vpack.c.bf16 %v387_v32, %v386_v31 }
  0x20   :  { %615 = vmatpush1.bf16.msra.mxu0 %v614_v34 }
  0x21   :  { %74 = vmatprep.subr.mxu0 %v669_v35 }
  0x24   :  { %75 = vmatpush1.msra.mxu0 %v33_v36 }
  0x25   :  { %107 = vmatmul.mubr.f32.vlgmr.msra.gmra.mrb[0].mxu0 %v15_v37  ;;  %652 = vmatprep.subr.bf16.mxu0 %v668_v0 }
  0x26   :  { %589 = vmatprep.mubr.msk.f32.mxu0 %vm670_vm1, %v669_v35  ;;  %654 = vmatpush3.bf16.msra.mxu0 %v653_v20 }
  0x27   :  { %655 = vmatprep.subr.bf16.mxu0 %v668_v0 }
  0x2a   :  { %657 = vmatpush3.bf16.msra.mxu0 %v656_v22 }
  0x2b   :  { %658 = vmatprep.subr.bf16.mxu0 %v668_v0 }
  0x2e   :  { %660 = vmatpush3.bf16.msra.mxu0 %v659_v26 }
  0x2f   :  { %661 = vmatprep.subr.bf16.mxu0 %v668_v0 }
  0x32   :  { %663 = vmatpush3.bf16.msra.mxu0 %v662_v33 }
  0xf8   :  { %v108_v48 = vpop.f32.mrb[0].mxu0 }
  0xf9   :  { %v109_v50 = vadd.f32 %v108_v48, %v37_v45  ;;  %v110_v51 = vpop.f32.mrb[1].mxu0 }
  0xfb   :  { %533 = vmatmul.mubr.msk.f32.vlgmr.msra.gmra.mrb[0].mxu1 %vm124_vm2, %v109_v50 }
  0xfc   :  { %630 = vmatpush3.bf16.msra.mxu1 %v629_v49  ;;  %551 = vmatprep.mubr.msk.f32.mxu1 %vm670_vm1, %v669_v35 }
  0xfd   :  { %631 = vmatprep.subr.bf16.mxu1 %v668_v0 }
 0x100   :  { %633 = vmatpush3.bf16.msra.mxu1 %v632_v54 }
 0x101   :  { %634 = vmatprep.subr.bf16.mxu1 %v668_v0 }
 0x104   :  { %636 = vmatpush3.bf16.msra.mxu1 %v635_v57 }
 0x105   :  { %637 = vmatprep.subr.bf16.mxu1 %v668_v0 }
 0x108   :  { %639 = vmatpush3.bf16.msra.mxu1 %v638_v60 }
 0x109   :  { %640 = vmatprep.subr.bf16.mxu1 %v668_v0 }
 0x1ce   :  { %v194_v2 = vpop.f32.mrb[0].mxu1 }
 0x1cf   :  { %v195_v3 = vadd.f32 %v194_v2, %v123_v62  ;;  %v534_v4 = vpop.f32.mrb[1].mxu1 }
 0x1d1   :  { %v198_v6 = vmax.f32 %v195_v3, 0.0 }
 0x1d3   :  { %201 = vst.msk [vmem:[%s905_s2] sm:$0xff] %vm124_vm2, %v198_v6  ;;  %552 = vmatmul.mubr.msk.f32.vlgmr.msra.gmra.mrb[2].mxu1 %vm124_vm2, %v198_v6 }
 0x1d4   :  { %642 = vmatpush3.bf16.msra.mxu1 %v641_v5  ;;  %570 = vmatprep.mubr.msk.f32.mxu1 %vm670_vm1, %v669_v35 }
 0x1d5   :  { %643 = vmatprep.subr.bf16.mxu1 %v668_v0 }
 0x1d8   :  { %645 = vmatpush3.bf16.msra.mxu1 %v644_v9 }
 0x1d9   :  { %646 = vmatprep.subr.bf16.mxu1 %v668_v0 }
 0x1dc   :  { %648 = vmatpush3.bf16.msra.mxu1 %v647_v12 }
 0x1dd   :  { %649 = vmatprep.subr.bf16.mxu1 %v668_v0  ;;  %v304_v0 = vsub.s32 3, %v784_v42 }
 0x1df   :  { %v305_v35 = vrot.slane %v790_v44, %v304_v0 }
 0x1e0   :  { %651 = vmatpush3.bf16.msra.mxu1 %v650_v15 }
 0x2a6   :  { %v283_v27 = vpop.f32.mrb[2].mxu1 }
 0x2a7   :  { %v284_v28 = vadd.f32 %v283_v27, %v213_v25  ;;  %v553_v29 = vpop.f32.mrb[3].mxu1 }
 0x2a9   :  { %v287_v30 = vmax.f32 %v284_v28, 0.0 }
 0x2ab   :  { %289 = vrot.lane.b32.xlu0 %v287_v30, %s671_s25  ;;  %571 = vmatmul.mubr.msk.f32.vlgmr.msra.gmra.mrb[4].mxu1 %vm124_vm2, %v287_v30 }
 0x31d   :  { %v290_v34 = vpop.permute.xlu0 %289 }
 0x31e   :  { %293 = vst.msk [vmem:[%s905_s2] sm:$0xff] %vm292_vm3, %v290_v34 }
 0x37e   :  { %v374_v36 = vpop.f32.mrb[4].mxu1 }
 0x37f   :  { %v375_v37 = vadd.f32 %v374_v36, %v305_v35  ;;  %v572_v38 = vpop.f32.mrb[5].mxu1 }
 0x381   :  { %v378_v39 = vmax.f32 %v375_v37, 0.0 }
 0x383   :  { %379 = vst.msk [vmem:[%s905_s2 + $0x8] sm:$0xff] %vm124_vm2, %v378_v39  ;;  %590 = vmatmul.mubr.msk.f32.vlgmr.msra.gmra.mrb[2].mxu0 %vm124_vm2, %v378_v39 }
 0x456   :  { %v461_v43 = vpop.f32.mrb[2].mxu0 }
 0x457   :  { %v462_v45 = vadd.f32 %v461_v43, %v391_v41  ;;  %v591_v46 = vpop.f32.mrb[3].mxu0 }
 0x459   :  { %466 = vrot.lane.b32.xlu0 %v462_v45, %s671_s25 }
 0x4cb   :  { %v467_v47 = vpop.permute.xlu0 %466 }
 0x4cc   :  { %470 = vst.msk [vmem:[%s905_s2 + $0x8] sm:$0xff] %vm469_vm4, %v467_v47 }

</bundles_post_ra>
